<compile_context>
chip_gen: v7x
topology: tpu7x:2x2x1
jax: 0.10.0
libtpu: 0.0.40
codegen_flags: <defaults>
</compile_context>

<pallas_src>
from functools import partial

import jax
import jax.numpy as jnp
import numpy as np
from jax.experimental import pallas as pl
from jax.experimental.pallas import tpu as pltpu


NPAD = 128   # padded feature-id axis (one-hot lane width / emb table sublanes)
HPAD = 128   # padded hidden width (full-lane BN/ReLU vregs)


# ----------------------------- Pallas kernel ------------------------------ #
def _deepfm_kernel(ids_ref, emb_ref, t_ref, smallp_ref, scal_ref, out_ref,
                   *, offsets):
    """Single-invocation DeepFM forward.

    ids_ref   : (B, F) int32     VMEM  raw per-field feature ids (no offsets)
    emb_ref   : (NPAD, K) f32    VMEM  zero-padded embedding table
    t_ref     : (F*NPAD, HPAD)   VMEM  precomputed emb @ w1 per field, stacked
    smallp_ref: (8, HPAD) f32    VMEM  rows: [fc_row, b1, gamma, beta, w2, 0..]
    scal_ref  : (3,) f32         SMEM  [lin_w, lin_b, b2]
    out_ref   : (B, 1) f32       VMEM
    """
    B, F = ids_ref.shape
    N_PAD, _ = emb_ref.shape

    ids = ids_ref[...]                                              # (B, F)
    lane = jax.lax.broadcasted_iota(jnp.int32, (B, N_PAD), 1)       # (B, NPAD)

    # Field-major-in-lanes one-hot (B, F*NPAD) + per-row multi-hot (B, NPAD).
    # Offsets are static model constants -> baked into the compare.
    # Note: out-of-range / negative ids yield an all-zero one-hot row
    # (silent zero embedding); range is guaranteed by construction here.
    multihot = jnp.zeros((B, N_PAD), jnp.float32)
    oh_blocks = []
    for f in range(F):                      # F small & static -> unrolled
        xo_f = ids[:, f:f + 1] + offsets[f]                         # (B, 1)
        oh_f = (xo_f == lane).astype(jnp.float32)                   # (B, NPAD)
        oh_blocks.append(oh_f)
        multihot = multihot + oh_f
    onehot = jnp.concatenate(oh_blocks, axis=1)                     # (B, F*NPAD)

    # ---- FM term: ids across fields are disjoint, so a multi-hot gather is
    # exact for both the sum and the sum of squares.
    emb = emb_ref[...]                                              # (NPAD, K)
    e_sum = jnp.dot(multihot, emb, preferred_element_type=jnp.float32)
    sum_sq = jnp.dot(multihot, emb * emb, preferred_element_type=jnp.float32)
    fm = 0.5 * jnp.sum(e_sum * e_sum - sum_sq, axis=1, keepdims=True)   # (B,1)

    # ---- first-order linear term (VPU multiply + lane reduce).
    smallp = smallp_ref[...]                                        # (8, HPAD)
    fc_row = smallp[0:1, :]
    fc_sum = jnp.sum(multihot * fc_row, axis=1, keepdims=True)      # (B, 1)
    lin = fc_sum * scal_ref[0] + scal_ref[1]

    # ---- MLP hidden: ONE deep-contraction MXU matmul (B,F*NPAD)@(F*NPAD,HPAD).
    h = jnp.dot(onehot, t_ref[...], preferred_element_type=jnp.float32)

    b1 = smallp[1:2, :]
    gamma = smallp[2:3, :]
    beta = smallp[3:4, :]
    w2row = smallp[4:5, :]

    # (+b1) -> BatchNorm1d (training batch stats) -> ReLU -> w2.
    h = h + b1
    mean = jnp.mean(h, axis=0, keepdims=True)                       # (1, HPAD)
    ctr = h - mean
    var = jnp.mean(ctr * ctr, axis=0, keepdims=True)
    h = ctr * jax.lax.rsqrt(var + 1e-5) * gamma + beta
    h = jnp.maximum(h, 0.0)
    # H->1 projection as VPU multiply + XLU lane reduce (no 1-wide MXU matmul).
    mlp_out = jnp.sum(h * w2row, axis=1, keepdims=True) + scal_ref[2]

    # TODO(synk): emit lane-dense (tiles, 128) output once batch is tiled;
    # at B=8 the (B,1) masked store is negligible.
    out_ref[...] = lin + fm + mlp_out


# --------------------------- parameter packing ----------------------------- #
def pack_deepfm_params(emb_table, fc_table, lin_w, lin_b,
                       w1, b1, gamma, beta, w2, b2):
    """One-time packing/padding of parameters into kernel-friendly layouts."""
    n_features, K = emb_table.shape
    FK, H = w1.shape
    F = FK // K
    assert FK == F * K
    assert n_features <= min(NPAD, HPAD), "pad width too small for feature table"
    assert H <= HPAD

    emb_pad = jnp.zeros((NPAD, K), jnp.float32).at[:n_features, :].set(emb_table)

    # Precompute T[f*NPAD + n, :H] = emb_pad[n, :] @ w1[f*K:(f+1)*K, :]
    # so the kernel's hidden layer is a single (B, F*NPAD)@(F*NPAD, HPAD) matmul.
    w1_r = jnp.asarray(w1, jnp.float32).reshape(F, K, H)
    t_blocks = jnp.einsum('nk,fkh->fnh', emb_pad, w1_r)             # (F, NPAD, H)
    t_pad = jnp.zeros((F * NPAD, HPAD), jnp.float32)
    t_pad = t_pad.at[:, :H].set(t_blocks.reshape(F * NPAD, H))

    smallp = jnp.zeros((8, HPAD), jnp.float32)
    smallp = smallp.at[0, :n_features].set(fc_table.reshape(-1))    # fc weights
    smallp = smallp.at[1, :H].set(b1.reshape(-1))                   # linear-1 bias
    smallp = smallp.at[2, :H].set(gamma.reshape(-1))                # BN gamma
    smallp = smallp.at[3, :H].set(beta.reshape(-1))                 # BN beta
    smallp = smallp.at[4, :H].set(w2.reshape(-1))                   # linear-2 weight

    scal = jnp.stack([lin_w.reshape(()), lin_b.reshape(()), b2.reshape(())])
    return emb_pad, t_pad, smallp, scal.astype(jnp.float32)


# -------------------------------- forward ---------------------------------- #
@partial(jax.jit, static_argnames=("offsets",))
def deepfm_forward(x, emb_pad, t_pad, smallp, scal, *, offsets):
    B, F = x.shape
    kernel = partial(_deepfm_kernel, offsets=offsets)

    vmem = pl.BlockSpec(memory_space=pltpu.MemorySpace.VMEM)
    smem = pl.BlockSpec(memory_space=pltpu.MemorySpace.SMEM)

    out = pl.pallas_call(
        kernel,
        out_shape=jax.ShapeDtypeStruct((B, 1), jnp.float32),
        in_specs=[vmem, vmem, vmem, vmem, smem],
        out_specs=vmem,
    )(x.astype(jnp.int32), emb_pad, t_pad, smallp, scal)
    return out.reshape(-1)                               # matches x.view(-1)


# ------------------------------- reference --------------------------------- #
def deepfm_ref(x, offsets_arr, emb_table, fc_table, lin_w, lin_b,
               w1, b1, gamma, beta, w2, b2):
    B, F = x.shape
    xo = x + offsets_arr[None, :]
    embed = jnp.take(emb_table, xo, axis=0)              # (B, F, K)
    fc_vals = jnp.take(fc_table, xo, axis=0)[..., 0]     # (B, F)
    e_sum = embed.sum(axis=1)
    fm = 0.5 * (e_sum ** 2 - (embed ** 2).sum(axis=1)).sum(axis=1, keepdims=True)
    lin = fc_vals.sum(axis=1, keepdims=True) * lin_w[0, 0] + lin_b[0, 0]
    h = embed.reshape(B, -1) @ w1 + b1
    mean = h.mean(axis=0, keepdims=True)
    var = ((h - mean) ** 2).mean(axis=0, keepdims=True)
    h = (h - mean) / jnp.sqrt(var + 1e-5) * gamma + beta
    h = jnp.maximum(h, 0.0)
    mlp_out = h @ w2 + b2[0, 0]
    return (lin + fm + mlp_out).reshape(-1)


# --------------------------------- main ------------------------------------ #
if __name__ == "__main__":
    # DeepFM(feature_dims=[10, 12, 14, 16], mlp_dims=[64], n_factors=128)
    feature_dims = [10, 12, 14, 16]
    n_factors = 128
    hidden = 64
    F = len(feature_dims)
    n_features = int(sum(feature_dims))
    embed_output_dim = F * n_factors
    offsets = tuple(int(o) for o in (0, *np.cumsum(feature_dims)[:-1]))
    offsets_arr = jnp.asarray(np.array(offsets), dtype=jnp.int32)

    B = 8   # keep batch a multiple of 8 (sublane-aligned)

    key = jax.random.PRNGKey(0)
    keys = jax.random.split(key, 11)

    # Deterministic synthetic parameters (not a checkpoint).
    emb_table = jax.random.normal(keys[0], (n_features, n_factors), jnp.float32) * 0.1
    fc_table = jax.random.normal(keys[1], (n_features, 1), jnp.float32) * 0.1
    lin_w = jax.random.normal(keys[2], (1, 1), jnp.float32) * 0.5
    lin_b = jax.random.normal(keys[3], (1, 1), jnp.float32) * 0.1
    w1 = jax.random.normal(keys[4], (embed_output_dim, hidden), jnp.float32) * 0.05
    b1 = jax.random.normal(keys[5], (1, hidden), jnp.float32) * 0.05
    gamma = 1.0 + 0.1 * jax.random.normal(keys[6], (1, hidden), jnp.float32)
    beta = 0.1 * jax.random.normal(keys[7], (1, hidden), jnp.float32)
    w2 = jax.random.normal(keys[8], (hidden, 1), jnp.float32) * 0.1
    b2 = jax.random.normal(keys[9], (1, 1), jnp.float32) * 0.1

    # Input: integer feature ids per field, shape (B, F).
    x = jnp.stack(
        [jax.random.randint(jax.random.fold_in(keys[10], i), (B,), 0, feature_dims[i])
         for i in range(F)], axis=1).astype(jnp.int32)

    packed = pack_deepfm_params(emb_table, fc_table, lin_w, lin_b,
                                w1, b1, gamma, beta, w2, b2)

    out = deepfm_forward(x, *packed, offsets=offsets)
    out = jax.block_until_ready(out)

    ref = deepfm_ref(x, offsets_arr, emb_table, fc_table, lin_w, lin_b,
                     w1, b1, gamma, beta, w2, b2)

    np.testing.assert_allclose(np.asarray(out), np.asarray(ref),
                               rtol=1e-4, atol=1e-4)
    print("KERNEL_OK")
</pallas_src>

<mosaic_0001>
module attributes {stable_mosaic.version = 11 : i64} {
  func.func @_deepfm_kernel(%arg0: memref<8x4xi32, #tpu.memory_space<vmem>>, %arg1: memref<128x128xf32, #tpu.memory_space<vmem>>, %arg2: memref<512x128xf32, #tpu.memory_space<vmem>>, %arg3: memref<8x128xf32, #tpu.memory_space<vmem>>, %arg4: memref<3xf32, #tpu.memory_space<smem>>, %arg5: memref<8x1xf32, #tpu.memory_space<vmem>>) attributes {dimension_semantics = [], scalar_prefetch = 0 : i64, scratch_operands = 0 : i64, tpu.core_type = #tpu.core_type<tc>} {
    %c0 = arith.constant 0 : index
    %c0_0 = arith.constant 0 : index
    %0 = vector.load %arg0[%c0, %c0_0] : memref<8x4xi32, #tpu.memory_space<vmem>>, vector<8x4xi32>
    %1 = tpu.iota {dimensions = array<i32: 1>} : vector<8x128xi32>
    %cst = arith.constant 0.000000e+00 : f32
    %2 = vector.broadcast %cst : f32 to vector<8x128xf32>
    %3 = vector.extract_strided_slice %0 {offsets = [0, 0], sizes = [8, 1], strides = [1, 1]} : vector<8x4xi32> to vector<8x1xi32>
    %c0_i32 = arith.constant 0 : i32
    %4 = vector.broadcast %c0_i32 : i32 to vector<8x1xi32>
    %5 = arith.addi %3, %4 : vector<8x1xi32>
    %6 = vector.broadcast %5 : vector<8x1xi32> to vector<8x128xi32>
    %7 = arith.cmpi eq, %6, %1 : vector<8x128xi32>
    %8 = arith.extui %7 : vector<8x128xi1> to vector<8x128xi32>
    %9 = arith.sitofp %8 : vector<8x128xi32> to vector<8x128xf32>
    %10 = arith.addf %2, %9 : vector<8x128xf32>
    %11 = vector.extract_strided_slice %0 {offsets = [0, 1], sizes = [8, 1], strides = [1, 1]} : vector<8x4xi32> to vector<8x1xi32>
    %c10_i32 = arith.constant 10 : i32
    %12 = vector.broadcast %c10_i32 : i32 to vector<8x1xi32>
    %13 = arith.addi %11, %12 : vector<8x1xi32>
    %14 = vector.broadcast %13 : vector<8x1xi32> to vector<8x128xi32>
    %15 = arith.cmpi eq, %14, %1 : vector<8x128xi32>
    %16 = arith.extui %15 : vector<8x128xi1> to vector<8x128xi32>
    %17 = arith.sitofp %16 : vector<8x128xi32> to vector<8x128xf32>
    %18 = arith.addf %10, %17 : vector<8x128xf32>
    %19 = vector.extract_strided_slice %0 {offsets = [0, 2], sizes = [8, 1], strides = [1, 1]} : vector<8x4xi32> to vector<8x1xi32>
    %c22_i32 = arith.constant 22 : i32
    %20 = vector.broadcast %c22_i32 : i32 to vector<8x1xi32>
    %21 = arith.addi %19, %20 : vector<8x1xi32>
    %22 = vector.broadcast %21 : vector<8x1xi32> to vector<8x128xi32>
    %23 = arith.cmpi eq, %22, %1 : vector<8x128xi32>
    %24 = arith.extui %23 : vector<8x128xi1> to vector<8x128xi32>
    %25 = arith.sitofp %24 : vector<8x128xi32> to vector<8x128xf32>
    %26 = arith.addf %18, %25 : vector<8x128xf32>
    %27 = vector.extract_strided_slice %0 {offsets = [0, 3], sizes = [8, 1], strides = [1, 1]} : vector<8x4xi32> to vector<8x1xi32>
    %c36_i32 = arith.constant 36 : i32
    %28 = vector.broadcast %c36_i32 : i32 to vector<8x1xi32>
    %29 = arith.addi %27, %28 : vector<8x1xi32>
    %30 = vector.broadcast %29 : vector<8x1xi32> to vector<8x128xi32>
    %31 = arith.cmpi eq, %30, %1 : vector<8x128xi32>
    %32 = arith.extui %31 : vector<8x128xi1> to vector<8x128xi32>
    %33 = arith.sitofp %32 : vector<8x128xi32> to vector<8x128xf32>
    %34 = arith.addf %26, %33 : vector<8x128xf32>
    %35 = tpu.concatenate %9, %17, %25, %33 in 1 : vector<8x128xf32>, vector<8x128xf32>, vector<8x128xf32>, vector<8x128xf32> -> vector<8x512xf32>
    %c0_1 = arith.constant 0 : index
    %c0_2 = arith.constant 0 : index
    %36 = vector.load %arg1[%c0_1, %c0_2] : memref<128x128xf32, #tpu.memory_space<vmem>>, vector<128x128xf32>
    %cst_3 = arith.constant dense<0.000000e+00> : vector<8x128xf32>
    %37 = tpu.matmul %34, %36, %cst_3 {dimension_numbers = #tpu.dot_dimension_numbers<[1], [0], [0], [1], [0, 0, 1, 1], [], []>} : vector<8x128xf32>, vector<128x128xf32>, vector<8x128xf32> -> vector<8x128xf32>
    %38 = arith.mulf %36, %36 : vector<128x128xf32>
    %cst_4 = arith.constant dense<0.000000e+00> : vector<8x128xf32>
    %39 = tpu.matmul %34, %38, %cst_4 {dimension_numbers = #tpu.dot_dimension_numbers<[1], [0], [0], [1], [0, 0, 1, 1], [], []>} : vector<8x128xf32>, vector<128x128xf32>, vector<8x128xf32> -> vector<8x128xf32>
    %40 = arith.mulf %37, %37 : vector<8x128xf32>
    %41 = arith.subf %40, %39 : vector<8x128xf32>
    %cst_5 = arith.constant dense<0.000000e+00> : vector<8xf32>
    %42 = vector.multi_reduction <add>, %41, %cst_5 [1] : vector<8x128xf32> to vector<8xf32>
    %43 = vector.shape_cast %42 : vector<8xf32> to vector<8x1xf32>
    %cst_6 = arith.constant 5.000000e-01 : f32
    %44 = vector.broadcast %cst_6 : f32 to vector<8x1xf32>
    %45 = arith.mulf %44, %43 : vector<8x1xf32>
    %c0_7 = arith.constant 0 : index
    %c0_8 = arith.constant 0 : index
    %46 = vector.load %arg3[%c0_7, %c0_8] : memref<8x128xf32, #tpu.memory_space<vmem>>, vector<8x128xf32>
    %47 = vector.extract_strided_slice %46 {offsets = [0, 0], sizes = [1, 128], strides = [1, 1]} : vector<8x128xf32> to vector<1x128xf32>
    %48 = vector.broadcast %47 : vector<1x128xf32> to vector<8x128xf32>
    %49 = arith.mulf %34, %48 : vector<8x128xf32>
    %cst_9 = arith.constant dense<0.000000e+00> : vector<8xf32>
    %50 = vector.multi_reduction <add>, %49, %cst_9 [1] : vector<8x128xf32> to vector<8xf32>
    %51 = vector.shape_cast %50 : vector<8xf32> to vector<8x1xf32>
    %c0_10 = arith.constant 0 : index
    %52 = memref.load %arg4[%c0_10] : memref<3xf32, #tpu.memory_space<smem>>
    %53 = vector.broadcast %52 : f32 to vector<8x1xf32>
    %54 = arith.mulf %51, %53 : vector<8x1xf32>
    %c1 = arith.constant 1 : index
    %55 = memref.load %arg4[%c1] : memref<3xf32, #tpu.memory_space<smem>>
    %56 = vector.broadcast %55 : f32 to vector<8x1xf32>
    %57 = arith.addf %54, %56 : vector<8x1xf32>
    %c0_11 = arith.constant 0 : index
    %c0_12 = arith.constant 0 : index
    %58 = vector.load %arg2[%c0_11, %c0_12] : memref<512x128xf32, #tpu.memory_space<vmem>>, vector<512x128xf32>
    %cst_13 = arith.constant dense<0.000000e+00> : vector<8x128xf32>
    %59 = tpu.matmul %35, %58, %cst_13 {dimension_numbers = #tpu.dot_dimension_numbers<[1], [0], [0], [1], [0, 0, 1, 1], [], []>} : vector<8x512xf32>, vector<512x128xf32>, vector<8x128xf32> -> vector<8x128xf32>
    %60 = vector.extract_strided_slice %46 {offsets = [1, 0], sizes = [1, 128], strides = [1, 1]} : vector<8x128xf32> to vector<1x128xf32>
    %61 = vector.extract_strided_slice %46 {offsets = [2, 0], sizes = [1, 128], strides = [1, 1]} : vector<8x128xf32> to vector<1x128xf32>
    %62 = vector.extract_strided_slice %46 {offsets = [3, 0], sizes = [1, 128], strides = [1, 1]} : vector<8x128xf32> to vector<1x128xf32>
    %63 = vector.extract_strided_slice %46 {offsets = [4, 0], sizes = [1, 128], strides = [1, 1]} : vector<8x128xf32> to vector<1x128xf32>
    %64 = vector.broadcast %60 : vector<1x128xf32> to vector<8x128xf32>
    %65 = arith.addf %59, %64 : vector<8x128xf32>
    %cst_14 = arith.constant dense<0.000000e+00> : vector<128xf32>
    %66 = vector.multi_reduction <add>, %65, %cst_14 [0] : vector<8x128xf32> to vector<128xf32>
    %67 = vector.shape_cast %66 : vector<128xf32> to vector<1x128xf32>
    %cst_15 = arith.constant 8.000000e+00 : f32
    %68 = vector.broadcast %cst_15 : f32 to vector<1x128xf32>
    %69 = arith.divf %67, %68 : vector<1x128xf32>
    %70 = vector.broadcast %69 : vector<1x128xf32> to vector<8x128xf32>
    %71 = arith.subf %65, %70 : vector<8x128xf32>
    %72 = arith.mulf %71, %71 : vector<8x128xf32>
    %cst_16 = arith.constant dense<0.000000e+00> : vector<128xf32>
    %73 = vector.multi_reduction <add>, %72, %cst_16 [0] : vector<8x128xf32> to vector<128xf32>
    %74 = vector.shape_cast %73 : vector<128xf32> to vector<1x128xf32>
    %cst_17 = arith.constant 8.000000e+00 : f32
    %75 = vector.broadcast %cst_17 : f32 to vector<1x128xf32>
    %76 = arith.divf %74, %75 : vector<1x128xf32>
    %cst_18 = arith.constant 9.99999974E-6 : f32
    %77 = vector.broadcast %cst_18 : f32 to vector<1x128xf32>
    %78 = arith.addf %76, %77 : vector<1x128xf32>
    %79 = math.rsqrt %78 : vector<1x128xf32>
    %80 = vector.broadcast %79 : vector<1x128xf32> to vector<8x128xf32>
    %81 = arith.mulf %71, %80 : vector<8x128xf32>
    %82 = vector.broadcast %61 : vector<1x128xf32> to vector<8x128xf32>
    %83 = arith.mulf %81, %82 : vector<8x128xf32>
    %84 = vector.broadcast %62 : vector<1x128xf32> to vector<8x128xf32>
    %85 = arith.addf %83, %84 : vector<8x128xf32>
    %cst_19 = arith.constant 0.000000e+00 : f32
    %86 = vector.broadcast %cst_19 : f32 to vector<8x128xf32>
    %87 = arith.maximumf %85, %86 : vector<8x128xf32>
    %88 = vector.broadcast %63 : vector<1x128xf32> to vector<8x128xf32>
    %89 = arith.mulf %87, %88 : vector<8x128xf32>
    %cst_20 = arith.constant dense<0.000000e+00> : vector<8xf32>
    %90 = vector.multi_reduction <add>, %89, %cst_20 [1] : vector<8x128xf32> to vector<8xf32>
    %91 = vector.shape_cast %90 : vector<8xf32> to vector<8x1xf32>
    %c2 = arith.constant 2 : index
    %92 = memref.load %arg4[%c2] : memref<3xf32, #tpu.memory_space<smem>>
    %93 = vector.broadcast %92 : f32 to vector<8x1xf32>
    %94 = arith.addf %91, %93 : vector<8x1xf32>
    %95 = arith.addf %57, %45 : vector<8x1xf32>
    %96 = arith.addf %95, %94 : vector<8x1xf32>
    %c0_21 = arith.constant 0 : index
    %c0_22 = arith.constant 0 : index
    %97 = vector.load %arg5[%c0_21, %c0_22] : memref<8x1xf32, #tpu.memory_space<vmem>>, vector<8x1xf32>
    tpu.vector_store %arg5[%c0_21, %c0_22], %96 {strides = array<i32>} : memref<8x1xf32, #tpu.memory_space<vmem>>, vector<8x1xf32>,
    return
  }
}

</mosaic_0001>

<bundles_post_ra>
// kernel: deepfm_forward.1
= control target key start
LH: loop header
LB: loop body
LE: loop exit
PB: predicated region body
PF: predicated region fallthrough
CT: control target
= control target key end

     0   :  { %10 = vsyncpa [#allocation3], 0  ;;  %s1075_s0 = inlined_call_operand.vmem [shape: s32[8,4], index: 0, kind: input, shape index: {}]   ;;  %s1076_s1 = inlined_call_operand.hbm [shape: f32[128,128], index: 1, kind: input, shape index: {}]   ;;  %s1077_s2 = inlined_call_operand.hbm [shape: f32[512,128], index: 2, kind: input, shape index: {}]   ;;  %s1078_s3 = inlined_call_operand.vmem [shape: f32[8,128], index: 3, kind: input, shape index: {}]   ;;  %s1079_s4 = inlined_call_operand.vmem [shape: f32[3], index: 4, kind: input, shape index: {}]   ;;  %s1080_s5 = inlined_call_operand.vmem [shape: f32[8,1], index: 5, kind: output, shape index: {}]  }
   0x1   :  { %11 = vsyncpa [#allocation6], 0 }
   0x2   :  { %12 = vsyncpa [#allocation4], 0  ;;  %s924_s18 = smov [#allocation2]   ;;  %s862_s22 = scalar_lea.hbm %s1076_s1, 2048 }
   0x3   :  { %s20_s19 = sshll.u32 %s924_s18, 4  ;;  %p863_p0 = scmp.ne.s32.totalorder %s1076_s1, %s862_s22  ;;  %s21_s19 = int_to_ptr.vmem [resolvable:$true] %s20_s19 }
   0x4   :  { %p866_p1 = scmp.lt.u32.totalorder %s862_s22, %s1076_s1 }
   0x6   :  { %p868_p2 = pnand %p866_p1, %p863_p0 }
   0x8   :  { %871 = shalt.err (!%p868_p2)
}
   0x9   :  { %s872_s27 = scalar_lea.vmem %s21_s19, 2048  ;;  %p877_p4 = scmp.lt.s32.totalorder %s21_s19, %s21_s19 }
   0xa   :  { %p873_p3 = scmp.ne.s32.totalorder %s21_s19, %s872_s27  ;;  %p878_p5 = scmp.lt.s32.totalorder %s872_s27, %s872_s27 }
   0xc   :  { %p879_p6 = por %p878_p5, %p877_p4 }
   0xe   :  { %p880_p7 = pnand %p879_p6, %p873_p3 }
  0x10   :  { %883 = shalt.err (!%p880_p7)
}
  0x11   :  { %s925_s28 = smov 128   ;;  %s926_s29 = smov 8  }
  0x12   :  { %26 = dma.hbm_to_vmem [thread:$0]  %s1076_s1, 2048, %s21_s19, [#allocation3], %s925_s28, %s925_s28, %s926_s29  }
  0x13   :  { %s927_s7 = smov [#allocation5]   ;;  %s47_s11 = sshll.u32 %s1079_s4, 4  ;;  %s48_s11 = int_to_ptr.vmem [resolvable:$true] %s47_s11 }
  0x14   :  { %s32_s8 = sshll.u32 %s927_s7, 4  ;;  %s884_s14 = scalar_lea.hbm %s1077_s2, 8192  ;;  %s33_s8 = int_to_ptr.vmem [resolvable:$true] %s32_s8 }
  0x15   :  { %p885_p8 = scmp.ne.s32.totalorder %s1077_s2, %s884_s14  ;;  %p888_p9 = scmp.lt.u32.totalorder %s884_s14, %s1077_s2 }
  0x17   :  { %p890_p10 = pnand %p888_p9, %p885_p8 }
  0x19   :  { %893 = shalt.err (!%p890_p10)
}
  0x1a   :  { %s894_s1 = scalar_lea.vmem %s33_s8, 8192  ;;  %p899_p12 = scmp.lt.s32.totalorder %s33_s8, %s33_s8 }
  0x1b   :  { %p895_p11 = scmp.ne.s32.totalorder %s33_s8, %s894_s1  ;;  %p900_p13 = scmp.lt.s32.totalorder %s894_s1, %s894_s1 }
  0x1d   :  { %p901_p0 = por %p900_p13, %p899_p12 }
  0x1f   :  { %p902_p1 = pnand %p901_p0, %p895_p11 }
  0x21   :  { %905 = shalt.err (!%p902_p1)
}
  0x22   :  { %38 = dma.hbm_to_vmem [thread:$0]  %s1077_s2, 8192, %s33_s8, [#allocation6], %s925_s28, %s925_s28, %s926_s29  }
  0x23   :  { %s906_s20 = scalar_lea.vmem %s48_s11, 16  ;;  %p911_p3 = scmp.lt.s32.totalorder %s48_s11, %s48_s11 }
  0x24   :  { %p907_p2 = scmp.ne.s32.totalorder %s48_s11, %s906_s20  ;;  %p912_p4 = scmp.lt.s32.totalorder %s906_s20, %s906_s20 }
  0x26   :  { %p913_p5 = por %p912_p4, %p911_p3 }
  0x28   :  { %p914_p6 = pnand %p913_p5, %p907_p2 }
  0x2a   :  { %917 = shalt.err (!%p914_p6)
}
  0x2b   :  { %s928_s21 = smov [#allocation7]  }
  0x2c   :  { %50 = dma.vmem_to_smem %s48_s11, 16, %s928_s21, [#allocation4]  }
  0x2d   :  { %918 = dma.done.wait [#allocation3], 2048  }
  0x2e   :  { %919 = vsyncadd [#allocation3], 4294965248 }
  0x2f   :  { %920 = dma.done.wait [#allocation6], 8192  }
  0x30   :  { %921 = vsyncadd [#allocation6], 4294959104 }
  0x31   :  { %922 = dma.done.wait [#allocation4], 16  }
  0x32   :  { %923 = vsyncadd [#allocation4], 4294967280 }
  0x33   :  { %60 = sfence }
  0x34   :  { %v61_v0 = vld [vmem:[%s1075_s0] sm:$0xff]  ;;  %v95_v1 = vld [vmem:[#allocation2] sm:$0xff]  ;;  %v929_v2 = vmov 0   ;;  %v930_v3 = vmov 2   ;;  %v96_v5 = vld [vmem:[#allocation2 + $0x8] sm:$0xff]  ;;  %v931_v7 = vmov 0.0|0.0  }
  0x35   :  { %855 = vset.pattern.permute.xlu0 %v929_v2  ;;  %857 = vset.pattern.permute.xlu1 %v930_v3  ;;  %v79_v4 = vadd.s32 22, %v61_v0  ;;  %v97_v6 = vld [vmem:[#allocation2 + $0x10] sm:$0xff]  ;;  %v731_v8 = vpack.c.bf16 %v96_v5, %v95_v1  ;;  %v181_v9 = vmul.f32 %v95_v1, %v95_v1  ;;  %v182_v10 = vmul.f32 %v96_v5, %v96_v5  ;;  %v98_v11 = vld [vmem:[#allocation2 + $0x18] sm:$0xff]  ;;  %v99_v15 = vld [vmem:[#allocation2 + $0x20] sm:$0xff]  ;;  %s550_s24 = sld [smem:[#allocation7 + $0x1]]  ;;  %s555_s25 = sld [smem:[#allocation7 + $0x2]] }
  0x36   :  { %65 = vperm.xlu0 %855, %v61_v0   ;;  %730 = vmatprep.subr.bf16.mxu0 %v931_v7  ;;  %v71_v12 = vadd.s32 10, %v61_v0  ;;  %v183_v13 = vmul.f32 %v97_v6, %v97_v6  ;;  %v184_v14 = vmul.f32 %v98_v11, %v98_v11  ;;  %v100_v16 = vld [vmem:[#allocation2 + $0x28] sm:$0xff]  ;;  %v87_v17 = vadd.s32 36, %v61_v0  ;;  %v101_v25 = vld [vmem:[#allocation2 + $0x30] sm:$0xff]  ;;  %v102_v26 = vld [vmem:[#allocation2 + $0x38] sm:$0xff] }
  0x37   :  { %81 = vperm.xlu1 %857, %v79_v4   ;;  %754 = vmatprep.subr.bf16.mxu1 %v931_v7  ;;  %v755_v18 = vpack.c.bf16 %v182_v10, %v181_v9  ;;  %v734_v19 = vpack.c.bf16 %v98_v11, %v97_v6  ;;  %v932_v20 = vmov 1   ;;  %v185_v22 = vmul.f32 %v99_v15, %v99_v15  ;;  %v103_v31 = vld [vmem:[#allocation2 + $0x40] sm:$0xff]  ;;  %v104_v32 = vld [vmem:[#allocation2 + $0x48] sm:$0xff]  ;;  %v105_v37 = vld [vmem:[#allocation2 + $0x50] sm:$0xff] }
  0x38   :  { %732 = vmatpush3.bf16.msra.mxu0 %v731_v8  ;;  %v758_v21 = vpack.c.bf16 %v184_v14, %v183_v13  ;;  %v186_v23 = vmul.f32 %v100_v16, %v100_v16  ;;  %v933_v24 = vmov 3   ;;  %v737_v27 = vpack.c.bf16 %v100_v16, %v99_v15  ;;  %v106_v38 = vld [vmem:[#allocation2 + $0x58] sm:$0xff]  ;;  %v107_v44 = vld [vmem:[#allocation2 + $0x60] sm:$0xff]  ;;  %v108_v45 = vld [vmem:[#allocation2 + $0x68] sm:$0xff] }
  0x39   :  { %733 = vmatprep.subr.bf16.mxu0 %v931_v7  ;;  %756 = vmatpush3.bf16.msra.mxu1 %v755_v18  ;;  %v187_v29 = vmul.f32 %v101_v25, %v101_v25  ;;  %v188_v30 = vmul.f32 %v102_v26, %v102_v26  ;;  %v740_v33 = vpack.c.bf16 %v102_v26, %v101_v25  ;;  %vm934_vm0 = vmmov 0   ;;  %v109_v50 = vld [vmem:[#allocation2 + $0x70] sm:$0xff]  ;;  %v110_v51 = vld [vmem:[#allocation2 + $0x78] sm:$0xff]  ;;  %v302_v56 = vld [vmem:[#allocation5 + $0x80] sm:$0xff] }
  0x3a   :  { %856 = vset.pattern.permute.xlu0 %v932_v20  ;;  %757 = vmatprep.subr.bf16.mxu1 %v931_v7  ;;  %v761_v28 = vpack.c.bf16 %v186_v23, %v185_v22  ;;  %v189_v35 = vmul.f32 %v103_v31, %v103_v31  ;;  %v190_v36 = vmul.f32 %v104_v32, %v104_v32  ;;  %v935_v39 = vmov 0.0   ;;  %v303_v57 = vld [vmem:[#allocation5 + $0x88] sm:$0xff]  ;;  %v334_v58 = vld [vmem:[#allocation5 + $0x180] sm:$0xff]  ;;  %v1040_v11 = vld [vmem:[%s1078_s3] sm:$0xff]  ;;  %s280_s3 = sld [smem:[#allocation7]] }
  0x3b   :  { %73 = vperm.xlu0 %856, %v71_v12   ;;  %858 = vset.pattern.permute.xlu1 %v933_v24  ;;  %v764_v34 = vpack.c.bf16 %v188_v30, %v187_v29  ;;  %v743_v40 = vpack.c.bf16 %v104_v32, %v103_v31  ;;  %v191_v42 = vmul.f32 %v105_v37, %v105_v37  ;;  %v335_v59 = vld [vmem:[#allocation5 + $0x188] sm:$0xff]  ;;  %v62_v0 = vlaneseq  ;;  %v286_v10 = vld [vmem:[#allocation5] sm:$0xff]  ;;  %v304_v20 = vld [vmem:[#allocation5 + $0x90] sm:$0xff] }
  0x3c   :  { %89 = vperm.xlu1 %858, %v87_v17   ;;  %735 = vmatpush3.bf16.msra.mxu0 %v734_v19  ;;  %v767_v41 = vpack.c.bf16 %v190_v36, %v189_v35  ;;  %v192_v43 = vmul.f32 %v106_v38, %v106_v38  ;;  %v746_v46 = vpack.c.bf16 %v106_v38, %v105_v37  ;;  %v287_v13 = vld [vmem:[#allocation5 + $0x8] sm:$0xff]  ;;  %v318_v14 = vld [vmem:[#allocation5 + $0x100] sm:$0xff]  ;;  %v336_v22 = vld [vmem:[#allocation5 + $0x190] sm:$0xff]  ;;  %vm537_vm5 = vcmask 7168  }
  0x3d   :  { %759 = vmatpush3.bf16.msra.mxu1 %v758_v21  ;;  %736 = vmatprep.subr.bf16.mxu0 %v931_v7  ;;  %v193_v48 = vmul.f32 %v107_v44, %v107_v44  ;;  %v194_v49 = vmul.f32 %v108_v45, %v108_v45  ;;  %v749_v52 = vpack.c.bf16 %v108_v45, %v107_v44  ;;  %v1015_v1 = vand.u32 127, %v62_v0  ;;  %v319_v15 = vld [vmem:[#allocation5 + $0x108] sm:$0xff]  ;;  %v305_v21 = vld [vmem:[#allocation5 + $0x98] sm:$0xff]  ;;  %v288_v26 = vld [vmem:[#allocation5 + $0x10] sm:$0xff] }
  0x3e   :  { %760 = vmatprep.subr.bf16.mxu1 %v931_v7  ;;  %692 = vmatprep.mubr.msk.f32.mxu0 %vm934_vm0, %v935_v39  ;;  %v770_v47 = vpack.c.bf16 %v192_v43, %v191_v42  ;;  %v195_v54 = vmul.f32 %v109_v50, %v109_v50  ;;  %v196_v55 = vmul.f32 %v110_v51, %v110_v51  ;;  %v1021_v4 = vshrl.u32 %v62_v0, 7  ;;  %v337_v25 = vld [vmem:[#allocation5 + $0x198] sm:$0xff]  ;;  %v320_v29 = vld [vmem:[#allocation5 + $0x110] sm:$0xff]  ;;  %v306_v31 = vld [vmem:[#allocation5 + $0xa0] sm:$0xff] }
  0x3f   :  { %859 = vset.pattern.permute.xlu0 %v933_v24  ;;  %727 = vmatprep.mubr.msk.f32.mxu1 %vm934_vm0, %v935_v39  ;;  %v773_v53 = vpack.c.bf16 %v194_v49, %v193_v48  ;;  %v752_v60 = vpack.c.bf16 %v110_v51, %v109_v50  ;;  %v778_v62 = vpack.c.bf16 %v303_v57, %v302_v56  ;;  %v321_v30 = vld [vmem:[#allocation5 + $0x118] sm:$0xff]  ;;  %v339_v35 = vld [vmem:[#allocation5 + $0x1a8] sm:$0xff]  ;;  %v936_v42 = vmov 1.0   ;;  %v322_v45 = vld [vmem:[#allocation5 + $0x120] sm:$0xff] }
  0x40   :  { %738 = vmatpush3.bf16.msra.mxu0 %v737_v27  ;;  %v776_v61 = vpack.c.bf16 %v196_v55, %v195_v54  ;;  %v810_v63 = vpack.c.bf16 %v335_v59, %v334_v58  ;;  %v780_v23 = vpack.c.bf16 %v287_v13, %v286_v10  ;;  %v812_v24 = vpack.c.bf16 %v319_v15, %v318_v14  ;;  %v289_v27 = vld [vmem:[#allocation5 + $0x18] sm:$0xff]  ;;  %v340_v49 = vld [vmem:[#allocation5 + $0x1b0] sm:$0xff]  ;;  %v310_v59 = vld [vmem:[#allocation5 + $0xc0] sm:$0xff] }
  0x41   :  { %762 = vmatpush3.bf16.msra.mxu1 %v761_v28  ;;  %739 = vmatprep.subr.bf16.mxu0 %v931_v7  ;;  %v782_v32 = vpack.c.bf16 %v305_v21, %v304_v20  ;;  %v814_v37 = vpack.c.bf16 %v337_v25, %v336_v22  ;;  %v784_v38 = vpack.c.bf16 %v289_v27, %v288_v26  ;;  %v309_v48 = vld [vmem:[#allocation5 + $0xb8] sm:$0xff]  ;;  %v324_v57 = vld [vmem:[#allocation5 + $0x130] sm:$0xff]  ;;  %v327_v10 = vld [vmem:[#allocation5 + $0x148] sm:$0xff] }
  0x42   :  { %763 = vmatprep.subr.bf16.mxu1 %v931_v7  ;;  %v341_v50 = vld [vmem:[#allocation5 + $0x1b8] sm:$0xff]  ;;  %v344_v14 = vld [vmem:[#allocation5 + $0x1d0] sm:$0xff]  ;;  %v315_v25 = vld [vmem:[#allocation5 + $0xe8] sm:$0xff] }
  0x43   :  { %v293_v54 = vld [vmem:[#allocation5 + $0x38] sm:$0xff]  ;;  %v822_v56 = vpack.c.bf16 %v341_v50, %v340_v49  ;;  %v328_v22 = vld [vmem:[#allocation5 + $0x150] sm:$0xff]  ;;  %v346_v26 = vld [vmem:[#allocation5 + $0x1e0] sm:$0xff] }
  0x44   :  { %741 = vmatpush3.bf16.msra.mxu0 %v740_v33  ;;  %v307_v33 = vld [vmem:[#allocation5 + $0xa8] sm:$0xff]  ;;  %v325_v58 = vld [vmem:[#allocation5 + $0x138] sm:$0xff] }
  0x45   :  { %765 = vmatpush3.bf16.msra.mxu1 %v764_v34  ;;  %742 = vmatprep.subr.bf16.mxu0 %v931_v7  ;;  %v338_v34 = vld [vmem:[#allocation5 + $0x1a0] sm:$0xff]  ;;  %v786_v43 = vpack.c.bf16 %v307_v33, %v306_v31  ;;  %v824_v0 = vpack.c.bf16 %v325_v58, %v324_v57  ;;  %v313_v13 = vld [vmem:[#allocation5 + $0xd8] sm:$0xff]  ;;  %v347_v27 = vld [vmem:[#allocation5 + $0x1e8] sm:$0xff]  ;;  %v352_v57 = vsub.s32 1, %v1021_v4 }
  0x46   :  { %766 = vmatprep.subr.bf16.mxu1 %v931_v7  ;;  %v818_v44 = vpack.c.bf16 %v339_v35, %v338_v34  ;;  %v345_v15 = vld [vmem:[#allocation5 + $0x1d8] sm:$0xff]  ;;  %v299_v31 = vld [vmem:[#allocation5 + $0x68] sm:$0xff]  ;;  %v834_v33 = vpack.c.bf16 %v347_v27, %v346_v26  ;;  %v330_v34 = vld [vmem:[#allocation5 + $0x160] sm:$0xff]  ;;  %v527_v27 = vsub.s32 4, %v1021_v4 }
  0x47   :  { %v830_v21 = vpack.c.bf16 %v345_v15, %v344_v14  ;;  %v331_v35 = vld [vmem:[#allocation5 + $0x168] sm:$0xff] }
  0x48   :  { %744 = vmatpush3.bf16.msra.mxu0 %v743_v40  ;;  %v290_v40 = vld [vmem:[#allocation5 + $0x20] sm:$0xff] }
  0x49   :  { %768 = vmatpush3.bf16.msra.mxu1 %v767_v41  ;;  %745 = vmatprep.subr.bf16.mxu0 %v931_v7  ;;  %v291_v41 = vld [vmem:[#allocation5 + $0x28] sm:$0xff] }
  0x4a   :  { %769 = vmatprep.subr.bf16.mxu1 %v931_v7  ;;  %v788_v51 = vpack.c.bf16 %v291_v41, %v290_v40  ;;  %v836_v41 = vpack.c.bf16 %v331_v35, %v330_v34 }
  0x4c   :  { %747 = vmatpush3.bf16.msra.mxu0 %v746_v46  ;;  %v323_v46 = vld [vmem:[#allocation5 + $0x128] sm:$0xff] }
  0x4d   :  { %771 = vmatpush3.bf16.msra.mxu1 %v770_v47  ;;  %748 = vmatprep.subr.bf16.mxu0 %v931_v7  ;;  %v308_v47 = vld [vmem:[#allocation5 + $0xb0] sm:$0xff] }
  0x4e   :  { %772 = vmatprep.subr.bf16.mxu1 %v931_v7  ;;  %v790_v55 = vpack.c.bf16 %v309_v48, %v308_v47  ;;  %v332_v47 = vld [vmem:[#allocation5 + $0x170] sm:$0xff]  ;;  %v333_v48 = vld [vmem:[#allocation5 + $0x178] sm:$0xff] }
  0x4f   :  { %v840_v50 = vpack.c.bf16 %v333_v48, %v332_v47 }
  0x50   :  { %750 = vmatpush3.bf16.msra.mxu0 %v749_v52  ;;  %v820_v52 = vpack.c.bf16 %v323_v46, %v322_v45  ;;  %v301_v46 = vld [vmem:[#allocation5 + $0x78] sm:$0xff] }
  0x51   :  { %774 = vmatpush3.bf16.msra.mxu1 %v773_v53  ;;  %751 = vmatprep.subr.bf16.mxu0 %v931_v7  ;;  %v292_v53 = vld [vmem:[#allocation5 + $0x30] sm:$0xff] }
  0x52   :  { %775 = vmatprep.subr.bf16.mxu1 %v931_v7  ;;  %v275_v7 = vsub.s32 0, %v1021_v4 }
  0x54   :  { %753 = vmatpush3.bf16.msra.mxu0 %v752_v60  ;;  %v276_v19 = vrot.slane %v1040_v11, %v275_v7  ;;  %v311_v60 = vld [vmem:[#allocation5 + $0xc8] sm:$0xff] }
  0x55   :  { %777 = vmatpush3.bf16.msra.mxu1 %v776_v61  ;;  %779 = vmatprep.subr.bf16.mxu0 %v778_v62  ;;  %v342_v61 = vld [vmem:[#allocation5 + $0x1c0] sm:$0xff]  ;;  %v343_v62 = vld [vmem:[#allocation5 + $0x1c8] sm:$0xff]  ;;  %v794_v7 = vpack.c.bf16 %v311_v60, %v310_v59  ;;  %v353_v60 = vrot.slane %v1040_v11, %v352_v57 }
  0x56   :  { %811 = vmatprep.subr.bf16.mxu1 %v810_v63  ;;  %v792_v63 = vpack.c.bf16 %v293_v54, %v292_v53 }
  0xb5   :  { %v1017_v2 = vpop.permute.xlu0 %65 }
  0xb6   :  { %v1019_v3 = vpop.permute.xlu1 %81  ;;  %vm67_vm1 = vcmp.eq.s32.totalorder %v1017_v2, %v1015_v1 }
  0xb7   :  { %vm83_vm2 = vcmp.eq.s32.totalorder %v1019_v3, %v1015_v1  ;;  %v546_v8 = vsel %vm67_vm1, 1.0, %v935_v39 }
  0xb8   :  { %v548_v16 = vsel %vm83_vm2, 1.0, %v935_v39 }
  0xba   :  { %v74_v5 = vpop.permute.xlu0 %73 }
  0xbb   :  { %vm75_vm3 = vcmp.eq.s32.totalorder %v74_v5, %v1015_v1  ;;  %v90_v6 = vpop.permute.xlu1 %89  ;;  %v294_v5 = vld [vmem:[#allocation5 + $0x40] sm:$0xff] }
  0xbc   :  { %v547_v9 = vsel %vm75_vm3, 1.0, %v935_v39  ;;  %vm91_vm4 = vcmp.eq.s32.totalorder %v90_v6, %v1015_v1  ;;  %v295_v6 = vld [vmem:[#allocation5 + $0x48] sm:$0xff] }
  0xbd   :  { %v78_v12 = vadd.f32 %v547_v9, %v546_v8  ;;  %v549_v17 = vsel %vm91_vm4, 1.0, %v935_v39  ;;  %v816_v39 = vpack.c.bf16 %v321_v30, %v320_v29  ;;  %v826_v8 = vpack.c.bf16 %v343_v62, %v342_v61  ;;  %v326_v9 = vld [vmem:[#allocation5 + $0x140] sm:$0xff] }
  0xbe   :  { %v298_v30 = vld [vmem:[#allocation5 + $0x60] sm:$0xff] }
  0xbf   :  { %v86_v18 = vadd.f32 %v548_v16, %v78_v12  ;;  %v312_v12 = vld [vmem:[#allocation5 + $0xd0] sm:$0xff]  ;;  %v796_v16 = vpack.c.bf16 %v295_v6, %v294_v5  ;;  %v804_v40 = vpack.c.bf16 %v299_v31, %v298_v30  ;;  %v528_v30 = vrot.slane %v1040_v11, %v527_v27 }
  0xc0   :  { %v798_v20 = vpack.c.bf16 %v313_v13, %v312_v12 }
  0xc1   :  { %v94_v28 = vadd.f32 %v549_v17, %v86_v18  ;;  %v828_v17 = vpack.c.bf16 %v327_v10, %v326_v9  ;;  %v296_v18 = vld [vmem:[#allocation5 + $0x50] sm:$0xff] }
  0xc3   :  { %693 = vmatmul.mubr.f32.vlgmr.msra.gmra.mrb[0].mxu0 %v94_v28  ;;  %728 = vmatmul.mubr.f32.vlgmr.msra.gmra.mrb[0].mxu1 %v94_v28  ;;  %v277_v36 = vmul.f32 %v276_v19, %v94_v28  ;;  %v297_v19 = vld [vmem:[#allocation5 + $0x58] sm:$0xff] }
  0xc4   :  { %781 = vmatpush3.bf16.msra.mxu0 %v780_v23  ;;  %813 = vmatpush3.bf16.msra.mxu1 %v812_v24  ;;  %v329_v23 = vld [vmem:[#allocation5 + $0x158] sm:$0xff]  ;;  %v314_v24 = vld [vmem:[#allocation5 + $0xe0] sm:$0xff]  ;;  %v800_v28 = vpack.c.bf16 %v297_v19, %v296_v18 }
  0xc5   :  { %551 = vmatprep.mubr.msk.f32.mxu0 %vm75_vm3, %v936_v42  ;;  %553 = vmatprep.mubr.msk.f32.mxu1 %vm91_vm4, %v936_v42  ;;  %v832_v29 = vpack.c.bf16 %v329_v23, %v328_v22  ;;  %v521_v22 = vsub.s32 3, %v1021_v4 }
  0xc6   :  { %278 = vadd.xlane.f32.xlu1 %v277_v36  ;;  %783 = vmatprep.subr.bf16.mxu0 %v782_v32  ;;  %v802_v32 = vpack.c.bf16 %v315_v25, %v314_v24  ;;  %v316_v36 = vld [vmem:[#allocation5 + $0xf0] sm:$0xff] }
  0xc7   :  { %815 = vmatprep.subr.bf16.mxu1 %v814_v37  ;;  %v317_v37 = vld [vmem:[#allocation5 + $0xf8] sm:$0xff]  ;;  %v522_v26 = vrot.slane %v1040_v11, %v521_v22 }
  0xc8   :  { %785 = vmatpush3.bf16.msra.mxu0 %v784_v38  ;;  %817 = vmatpush3.bf16.msra.mxu1 %v816_v39  ;;  %v348_v38 = vld [vmem:[#allocation5 + $0x1f0] sm:$0xff]  ;;  %v349_v39 = vld [vmem:[#allocation5 + $0x1f8] sm:$0xff] }
  0xc9   :  { %787 = vmatprep.subr.bf16.mxu0 %v786_v43  ;;  %819 = vmatprep.subr.bf16.mxu1 %v818_v44  ;;  %v300_v43 = vld [vmem:[#allocation5 + $0x70] sm:$0xff]  ;;  %v806_v44 = vpack.c.bf16 %v317_v37, %v316_v36  ;;  %v838_v45 = vpack.c.bf16 %v349_v39, %v348_v38  ;;  %v284_v37 = vstv %s550_s24  ;;  %v533_v39 = vstv %s555_s25 }
  0xca   :  { %v808_v49 = vpack.c.bf16 %v301_v46, %v300_v43 }
  0xcc   :  { %789 = vmatpush3.bf16.msra.mxu0 %v788_v51  ;;  %821 = vmatpush3.bf16.msra.mxu1 %v820_v52 }
  0xcd   :  { %791 = vmatprep.subr.bf16.mxu0 %v790_v55  ;;  %823 = vmatprep.subr.bf16.mxu1 %v822_v56 }
  0xd0   :  { %793 = vmatpush3.bf16.msra.mxu0 %v792_v63  ;;  %825 = vmatpush3.bf16.msra.mxu1 %v824_v0 }
  0xd1   :  { %795 = vmatprep.subr.bf16.mxu0 %v794_v7  ;;  %827 = vmatprep.subr.bf16.mxu1 %v826_v8 }
  0xd4   :  { %797 = vmatpush3.bf16.msra.mxu0 %v796_v16  ;;  %829 = vmatpush3.bf16.msra.mxu1 %v828_v17 }
  0xd5   :  { %799 = vmatprep.subr.bf16.mxu0 %v798_v20  ;;  %831 = vmatprep.subr.bf16.mxu1 %v830_v21  ;;  %v516_v21 = vsub.s32 2, %v1021_v4 }
  0xd7   :  { %v517_v23 = vrot.slane %v1040_v11, %v516_v21 }
  0xd8   :  { %801 = vmatpush3.bf16.msra.mxu0 %v800_v28  ;;  %833 = vmatpush3.bf16.msra.mxu1 %v832_v29 }
  0xd9   :  { %803 = vmatprep.subr.bf16.mxu0 %v802_v32  ;;  %835 = vmatprep.subr.bf16.mxu1 %v834_v33  ;;  %v281_v33 = vstv %s280_s3 }
  0xdc   :  { %805 = vmatpush3.bf16.msra.mxu0 %v804_v40  ;;  %837 = vmatpush3.bf16.msra.mxu1 %v836_v41 }
  0xdd   :  { %807 = vmatprep.subr.bf16.mxu0 %v806_v44  ;;  %839 = vmatprep.subr.bf16.mxu1 %v838_v45 }
  0xe0   :  { %809 = vmatpush3.bf16.msra.mxu0 %v808_v49  ;;  %841 = vmatpush3.bf16.msra.mxu1 %v840_v50 }
  0xe3   :  { %552 = vmatmul.mubr.msk.f32.vlgmr.msra.gmra.mrb[2].mxu0 %vm67_vm1, %v936_v42  ;;  %554 = vmatmul.mubr.msk.f32.vlgmr.msra.gmra.mrb[2].mxu1 %vm83_vm2, %v936_v42 }
 0x153   :  { %v279_v34 = vpop.xlane.xlu1 %278 }
 0x154   :  { %v282_v36 = vmul.f32 %v281_v33, %v279_v34 }
 0x156   :  { %v285_v40 = vadd.f32 %v284_v37, %v282_v36 }
 0x196   :  { %v177_v51 = vpop.f32.mrb[0].mxu0  ;;  %v263_v52 = vpop.f32.mrb[0].mxu1 }
 0x197   :  { %v267_v53 = vmul.f32 %v177_v51, %v177_v51  ;;  %v694_v54 = vpop.f32.mrb[1].mxu0  ;;  %v729_v55 = vpop.f32.mrb[1].mxu1 }
 0x199   :  { %v268_v56 = vsub.f32 %v267_v53, %v263_v52 }
 0x19b   :  { %269 = vadd.xlane.f32.xlu0 %v268_v56 }
 0x1b6   :  { %v622_v58 = vpop.f32.mrb[2].mxu0  ;;  %v657_v59 = vpop.f32.mrb[2].mxu1 }
 0x1b7   :  { %v623_v2 = vpop.f32.mrb[3].mxu0  ;;  %v658_v61 = vpop.f32.mrb[3].mxu1 }
 0x1b8   :  { %v624_v62 = vadd.f32 %v623_v2, %v622_v58  ;;  %v659_v63 = vadd.f32 %v658_v61, %v657_v59 }
 0x1ba   :  { %v421_v0 = vadd.f32 %v624_v62, %v353_v60 }
 0x1bc   :  { %v491_v1 = vadd.f32 %v659_v63, %v421_v0 }
 0x1be   :  { %v494_v3 = vrot.slane %v491_v1, 4 }
 0x1c0   :  { %v495_v42 = vadd.f32 %v494_v3, %v491_v1 }
 0x1c2   :  { %v496_v5 = vrot.slane %v495_v42, 2 }
 0x1c4   :  { %v497_v6 = vadd.f32 %v496_v5, %v495_v42 }
 0x1c6   :  { %v498_v7 = vrot.slane %v497_v6, 1 }
 0x1c8   :  { %v499_v8 = vadd.f32 %v498_v7, %v497_v6 }
 0x1ca   :  { %v501_v9 = vmul.f32 0.125, %v499_v8 }
 0x1cc   :  { %v502_v10 = vsub.f32 %v491_v1, %v501_v9 }
 0x1ce   :  { %v503_v12 = vmul.f32 %v502_v10, %v502_v10 }
 0x1d0   :  { %v504_v13 = vrot.slane %v503_v12, 4 }
 0x1d2   :  { %v505_v14 = vadd.f32 %v504_v13, %v503_v12 }
 0x1d4   :  { %v506_v15 = vrot.slane %v505_v14, 2 }
 0x1d6   :  { %v507_v16 = vadd.f32 %v506_v15, %v505_v14 }
 0x1d8   :  { %v508_v17 = vrot.slane %v507_v16, 1 }
 0x1da   :  { %v509_v18 = vadd.f32 %v508_v17, %v507_v16 }
 0x1dc   :  { %v510_v19 = vmul.f32 0.125, %v509_v18 }
 0x1de   :  { %v511_v20 = vadd.f32 1e-05, %v510_v19 }
 0x1e0   :  { %860 = vrsqrt.f32 %v511_v20 }
 0x1ea   :  { %v861_v24 = vpop.eup %860 }
 0x1eb   :  { %v513_v25 = vmul.f32 %v861_v24, %v502_v10 }
 0x1ed   :  { %v518_v28 = vmul.f32 %v517_v23, %v513_v25 }
 0x1ef   :  { %v523_v29 = vadd.f32 %v522_v26, %v518_v28 }
 0x1f1   :  { %v524_v31 = vmax.f32 %v523_v29, 0.0 }
 0x1f3   :  { %v529_v32 = vmul.f32 %v528_v30, %v524_v31 }
 0x1f5   :  { %530 = vadd.xlane.f32.xlu0 %v529_v32 }
 0x228   :  { %v270_v35 = vpop.xlane.xlu0 %269 }
 0x229   :  { %v271_v38 = vmul.f32 0.5, %v270_v35 }
 0x22b   :  { %v535_v4 = vadd.f32 %v285_v40, %v271_v38 }
 0x282   :  { %v531_v41 = vpop.xlane.xlu0 %530 }
 0x283   :  { %v534_v43 = vadd.f32 %v533_v39, %v531_v41 }
 0x285   :  { %v536_v44 = vadd.f32 %v535_v4, %v534_v43 }
 0x287   :  { %538 = vst.msk [vmem:[%s1080_s5] sm:$0xff] %vm537_vm5, %v536_v44 }
 0x288   :  { %543 = vsyncpa [#allocation3], 1 }
 0x289   :  { %544 = vsyncpa [#allocation6], 1 }
 0x28a   :  { %545 = vsyncpa [#allocation4], 1 }

</bundles_post_ra>
